<compile_context>
chip_gen: v6e
topology: v6e:2x2x1
jax: 0.10.0
libtpu: 0.0.40
codegen_flags: <defaults>
</compile_context>

<pallas_src>
import functools

import jax
import jax.numpy as jnp
from jax.experimental import pallas as pl
from jax.experimental.pallas import tpu as pltpu

LANES = 128
MAX_TILE_ROWS = 2048        # 2048 x 128 x 4 B = 1 MiB per f32 tile
SPLITS = 2                  # leading parallel grid axis (covers v7x's 2 TensorCores)


def _round_up(a, b):
    return (a + b - 1) // b * b


def _cdiv(a, b):
    return -(-a // b)


def _bce_and_partials_kernel(x_ref, t_ref, bce_ref, acc_ref):
    """Pass 1: per-element BCE (logits form) + per-split (8,128) partial sums.

    acc_ref block is (1, 2, 8, LANES), resident across the inner (arbitrary) grid
    axis; slot 0 accumulates sum(p + t), slot 1 accumulates sum(p * t).
    """
    i = pl.program_id(1)

    x = x_ref[...].astype(jnp.float32)
    # Clamping the logit to [-100, 100] reproduces PyTorch's clamp of each log
    # term at -100 (to f32 precision); pad values (-100) land here too.
    x = jnp.clip(x, -100.0, 100.0)
    t = t_ref[...].astype(jnp.float32)

    e = jnp.exp(-jnp.abs(x))                       # single transcendental, reused
    p = jnp.where(x >= 0, 1.0, e) / (1.0 + e)      # numerically stable sigmoid(x)
    # BCE in logits form: softplus(x) - t*x  (== clamped BCE for |x| <= 100)
    bce_ref[...] = (jnp.maximum(x, 0.0) + jnp.log1p(e) - x * t).astype(bce_ref.dtype)

    # Reduce the tile to one (8, LANES) vreg per quantity: the reshape is a pure
    # view and the axis-0 sum is plain VPU vector adds (no per-tile XLU / SMEM
    # scalar round trip).
    rows, lanes = x.shape
    pt = (p + t).reshape(rows // 8, 8, lanes).sum(axis=0)
    ix = (p * t).reshape(rows // 8, 8, lanes).sum(axis=0)

    @pl.when(i == 0)
    def _():
        acc_ref[...] = jnp.zeros_like(acc_ref)

    acc_ref[0, 0, :, :] = acc_ref[0, 0, :, :] + pt
    acc_ref[0, 1, :, :] = acc_ref[0, 1, :, :] + ix


def _add_dice_kernel(dice_ref, bce_ref, out_ref):
    """Pass 2: out = bce + dice_loss (scalar from SMEM), streamed in-place."""
    out_ref[...] = bce_ref[...] + dice_ref[0]


@functools.partial(jax.jit, static_argnames=("smooth",))
def dice_bce_loss(inputs, targets, smooth=1.0):
    n = inputs.size
    x = jnp.ravel(inputs)
    t = jnp.ravel(targets)

    rows_needed = _cdiv(n, LANES)
    tile_rows = min(MAX_TILE_ROWS, _round_up(_cdiv(rows_needed, SPLITS), 8))
    rows_pad = _round_up(rows_needed, SPLITS * tile_rows)
    n_pad = rows_pad * LANES

    # No mask stream: pad logits with a large negative value (sigmoid ~ 0) and
    # targets with 0 so the padded tail contributes ~nothing to the dice sums.
    x = jnp.pad(x, (0, n_pad - n), constant_values=-100.0)
    t = jnp.pad(t, (0, n_pad - n), constant_values=0.0)
    x2 = x.reshape(rows_pad, LANES)
    t2 = t.reshape(rows_pad, LANES)

    inner_tiles = rows_pad // (SPLITS * tile_rows)
    total_tiles = rows_pad // tile_rows

    tile_spec1 = pl.BlockSpec((tile_rows, LANES),
                              lambda c, i: (c * inner_tiles + i, 0))
    acc_spec = pl.BlockSpec((1, 2, 8, LANES), lambda c, i: (c, 0, 0, 0))

    # Pass 1: fused BCE + partial dice sums.  Outer axis "parallel" (both TCs on
    # v7x), inner axis "arbitrary" (accumulator resident per split).
    bce, partials = pl.pallas_call(
        _bce_and_partials_kernel,
        out_shape=(jax.ShapeDtypeStruct((rows_pad, LANES), jnp.float32),
                   jax.ShapeDtypeStruct((SPLITS, 2, 8, LANES), jnp.float32)),
        grid=(SPLITS, inner_tiles),
        in_specs=[tile_spec1, tile_spec1],
        out_specs=(tile_spec1, acc_spec),
        compiler_params=pltpu.CompilerParams(
            dimension_semantics=("parallel", "arbitrary"),
            vmem_limit_bytes=32 * 1024 * 1024),
    )(x2, t2)

    # Tiny final reduction + dice scalar in plain JAX between the two calls.
    denom = jnp.sum(partials[:, 0])          # sum(p) + sum(t)
    inter = jnp.sum(partials[:, 1])          # sum(p * t)
    dice = 1.0 - (2.0 * inter + smooth) / (denom + smooth)
    dice = jnp.reshape(dice, (1,)).astype(jnp.float32)

    # Pass 2: stream bce once, add the dice scalar, write in place (aliased).
    tile_spec2 = pl.BlockSpec((tile_rows, LANES), lambda i: (i, 0))
    out2 = pl.pallas_call(
        _add_dice_kernel,
        out_shape=jax.ShapeDtypeStruct((rows_pad, LANES), jnp.float32),
        grid=(total_tiles,),
        in_specs=[pl.BlockSpec(memory_space=pltpu.MemorySpace.SMEM),
                  tile_spec2],
        out_specs=tile_spec2,
        input_output_aliases={1: 0},
        compiler_params=pltpu.CompilerParams(
            dimension_semantics=("parallel",),
            vmem_limit_bytes=32 * 1024 * 1024),
    )(dice, bce)

    return out2.reshape(-1)[:n]


def _reference(inputs, targets, smooth=1.0):
    p = jax.nn.sigmoid(jnp.ravel(inputs).astype(jnp.float32))
    t = jnp.ravel(targets).astype(jnp.float32)
    inter = jnp.sum(p * t)
    dice = 1.0 - (2.0 * inter + smooth) / (jnp.sum(p) + jnp.sum(t) + smooth)
    bce = -(t * jnp.maximum(jnp.log(p), -100.0)
            + (1.0 - t) * jnp.maximum(jnp.log(1.0 - p), -100.0))
    return bce + dice


if __name__ == "__main__":
    key = jax.random.PRNGKey(0)
    k1, k2 = jax.random.split(key)
    # Small logits/targets consistent with a segmentation-style loss, NCHW.
    inputs = jax.random.normal(k1, (2, 4, 16, 16), dtype=jnp.float32)
    targets = jax.random.bernoulli(k2, 0.3, (2, 4, 16, 16)).astype(jnp.float32)

    out = dice_bce_loss(inputs, targets, smooth=1.0)
    out = jax.block_until_ready(out)

    ref = _reference(inputs, targets, smooth=1.0)
    assert out.shape == (inputs.size,)
    assert jnp.allclose(out, ref, atol=1e-5, rtol=1e-5), "mismatch vs reference"

    print("KERNEL_OK")
</pallas_src>

<mosaic_0001>
module attributes {stable_mosaic.version = 11 : i64} {
  func.func @_bce_and_partials_kernel(%arg0: i32, %arg1: i32, %arg2: memref<8x128xf32, #tpu.memory_space<vmem>>, %arg3: memref<8x128xf32, #tpu.memory_space<vmem>>, %arg4: memref<8x128xf32, #tpu.memory_space<vmem>>, %arg5: memref<1x2x8x128xf32, #tpu.memory_space<vmem>>) attributes {dimension_semantics = [#tpu.dimension_semantics<parallel>, #tpu.dimension_semantics<arbitrary>], iteration_bounds = array<i64: 2, 1>, scalar_prefetch = 0 : i64, scratch_operands = 0 : i64, tpu.core_type = #tpu.core_type<tc>, window_params = [{transform_indices = @transform_0, window_bounds = array<i64: 8, 128>}, {transform_indices = @transform_1, window_bounds = array<i64: 8, 128>}, {transform_indices = @transform_2, window_bounds = array<i64: 8, 128>}, {transform_indices = @transform_3, window_bounds = array<i64: 1, 2, 8, 128>}]} {
    %c0 = arith.constant 0 : index
    %c0_0 = arith.constant 0 : index
    %0 = vector.load %arg2[%c0, %c0_0] : memref<8x128xf32, #tpu.memory_space<vmem>>, vector<8x128xf32>
    %cst = arith.constant -1.000000e+02 : f32
    %cst_1 = arith.constant 1.000000e+02 : f32
    %1 = vector.broadcast %cst : f32 to vector<8x128xf32>
    %2 = arith.maximumf %1, %0 : vector<8x128xf32>
    %3 = vector.broadcast %cst_1 : f32 to vector<8x128xf32>
    %4 = arith.minimumf %3, %2 : vector<8x128xf32>
    %c0_2 = arith.constant 0 : index
    %c0_3 = arith.constant 0 : index
    %5 = vector.load %arg3[%c0_2, %c0_3] : memref<8x128xf32, #tpu.memory_space<vmem>>, vector<8x128xf32>
    %6 = math.absf %4 : vector<8x128xf32>
    %cst_4 = arith.constant 0.000000e+00 : f32
    %7 = vector.broadcast %cst_4 : f32 to vector<8x128xf32>
    %8 = arith.subf %7, %6 : vector<8x128xf32>
    %9 = math.exp %8 : vector<8x128xf32>
    %cst_5 = arith.constant 0.000000e+00 : f32
    %10 = vector.broadcast %cst_5 : f32 to vector<8x128xf32>
    %11 = arith.cmpf oge, %4, %10 : vector<8x128xf32>
    %cst_6 = arith.constant 1.000000e+00 : f32
    %12 = vector.broadcast %cst_6 : f32 to vector<8x128xf32>
    %13 = arith.select %11, %12, %9 : vector<8x128xi1>, vector<8x128xf32>
    %cst_7 = arith.constant 1.000000e+00 : f32
    %14 = vector.broadcast %cst_7 : f32 to vector<8x128xf32>
    %15 = arith.addf %14, %9 : vector<8x128xf32>
    %16 = arith.divf %13, %15 : vector<8x128xf32>
    %cst_8 = arith.constant 0.000000e+00 : f32
    %17 = vector.broadcast %cst_8 : f32 to vector<8x128xf32>
    %18 = arith.maximumf %4, %17 : vector<8x128xf32>
    %19 = math.log1p %9 : vector<8x128xf32>
    %20 = arith.addf %18, %19 : vector<8x128xf32>
    %21 = arith.mulf %4, %5 : vector<8x128xf32>
    %22 = arith.subf %20, %21 : vector<8x128xf32>
    %c0_9 = arith.constant 0 : index
    %c0_10 = arith.constant 0 : index
    %23 = vector.load %arg4[%c0_9, %c0_10] : memref<8x128xf32, #tpu.memory_space<vmem>>, vector<8x128xf32>
    tpu.vector_store %arg4[%c0_9, %c0_10], %22 {strides = array<i32>} : memref<8x128xf32, #tpu.memory_space<vmem>>, vector<8x128xf32>,
    %24 = arith.addf %16, %5 : vector<8x128xf32>
    %25 = vector.shape_cast %24 : vector<8x128xf32> to vector<1x8x128xf32>
    %cst_11 = arith.constant dense<0.000000e+00> : vector<8x128xf32>
    %26 = vector.multi_reduction <add>, %25, %cst_11 [0] : vector<1x8x128xf32> to vector<8x128xf32>
    %27 = arith.mulf %16, %5 : vector<8x128xf32>
    %28 = vector.shape_cast %27 : vector<8x128xf32> to vector<1x8x128xf32>
    %cst_12 = arith.constant dense<0.000000e+00> : vector<8x128xf32>
    %29 = vector.multi_reduction <add>, %28, %cst_12 [0] : vector<1x8x128xf32> to vector<8x128xf32>
    %c0_i32 = arith.constant 0 : i32
    %30 = arith.cmpi eq, %arg1, %c0_i32 : i32
    %31 = arith.extui %30 : i1 to i32
    %c0_i32_13 = arith.constant 0 : i32
    %32 = arith.cmpi ne, %31, %c0_i32_13 : i32
    scf.if %32 {
      %cst_29 = arith.constant 0.000000e+00 : f32
      %45 = vector.broadcast %cst_29 : f32 to vector<1x2x8x128xf32>
      %c0_30 = arith.constant 0 : index
      %c0_31 = arith.constant 0 : index
      %c0_32 = arith.constant 0 : index
      %c0_33 = arith.constant 0 : index
      %46 = vector.load %arg5[%c0_30, %c0_31, %c0_32, %c0_33] : memref<1x2x8x128xf32, #tpu.memory_space<vmem>>, vector<1x2x8x128xf32>
      tpu.vector_store %arg5[%c0_30, %c0_31, %c0_32, %c0_33], %45 {strides = array<i32>} : memref<1x2x8x128xf32, #tpu.memory_space<vmem>>, vector<1x2x8x128xf32>,
    } else {
    }
    %c0_14 = arith.constant 0 : index
    %c0_15 = arith.constant 0 : index
    %c0_16 = arith.constant 0 : index
    %c0_17 = arith.constant 0 : index
    %33 = vector.load %arg5[%c0_14, %c0_15, %c0_16, %c0_17] : memref<1x2x8x128xf32, #tpu.memory_space<vmem>>, vector<1x1x8x128xf32>
    %34 = vector.shape_cast %33 : vector<1x1x8x128xf32> to vector<8x128xf32>
    %35 = arith.addf %34, %26 : vector<8x128xf32>
    %c0_18 = arith.constant 0 : index
    %c0_19 = arith.constant 0 : index
    %c0_20 = arith.constant 0 : index
    %c0_21 = arith.constant 0 : index
    %36 = vector.load %arg5[%c0_18, %c0_19, %c0_20, %c0_21] : memref<1x2x8x128xf32, #tpu.memory_space<vmem>>, vector<1x1x8x128xf32>
    %37 = vector.shape_cast %36 : vector<1x1x8x128xf32> to vector<8x128xf32>
    %38 = vector.shape_cast %35 : vector<8x128xf32> to vector<1x1x8x128xf32>
    tpu.vector_store %arg5[%c0_18, %c0_19, %c0_20, %c0_21], %38 {strides = array<i32>} : memref<1x2x8x128xf32, #tpu.memory_space<vmem>>, vector<1x1x8x128xf32>,
    %c0_22 = arith.constant 0 : index
    %c1 = arith.constant 1 : index
    %c0_23 = arith.constant 0 : index
    %c0_24 = arith.constant 0 : index
    %39 = vector.load %arg5[%c0_22, %c1, %c0_23, %c0_24] : memref<1x2x8x128xf32, #tpu.memory_space<vmem>>, vector<1x1x8x128xf32>
    %40 = vector.shape_cast %39 : vector<1x1x8x128xf32> to vector<8x128xf32>
    %41 = arith.addf %40, %29 : vector<8x128xf32>
    %c0_25 = arith.constant 0 : index
    %c1_26 = arith.constant 1 : index
    %c0_27 = arith.constant 0 : index
    %c0_28 = arith.constant 0 : index
    %42 = vector.load %arg5[%c0_25, %c1_26, %c0_27, %c0_28] : memref<1x2x8x128xf32, #tpu.memory_space<vmem>>, vector<1x1x8x128xf32>
    %43 = vector.shape_cast %42 : vector<1x1x8x128xf32> to vector<8x128xf32>
    %44 = vector.shape_cast %41 : vector<8x128xf32> to vector<1x1x8x128xf32>
    tpu.vector_store %arg5[%c0_25, %c1_26, %c0_27, %c0_28], %44 {strides = array<i32>} : memref<1x2x8x128xf32, #tpu.memory_space<vmem>>, vector<1x1x8x128xf32>,
    return
  }
  func.func @transform_0(%arg0: i32, %arg1: i32) -> (i32, i32) {
    %c1_i32 = arith.constant 1 : i32
    %0 = arith.muli %arg0, %c1_i32 : i32
    %1 = arith.addi %0, %arg1 : i32
    %c0_i32 = arith.constant 0 : i32
    %c0_i32_0 = arith.constant 0 : i32
    return %1, %c0_i32 : i32, i32
  }
  func.func @transform_1(%arg0: i32, %arg1: i32) -> (i32, i32) {
    %c1_i32 = arith.constant 1 : i32
    %0 = arith.muli %arg0, %c1_i32 : i32
    %1 = arith.addi %0, %arg1 : i32
    %c0_i32 = arith.constant 0 : i32
    %c0_i32_0 = arith.constant 0 : i32
    return %1, %c0_i32 : i32, i32
  }
  func.func @transform_2(%arg0: i32, %arg1: i32) -> (i32, i32) {
    %c1_i32 = arith.constant 1 : i32
    %0 = arith.muli %arg0, %c1_i32 : i32
    %1 = arith.addi %0, %arg1 : i32
    %c0_i32 = arith.constant 0 : i32
    %c0_i32_0 = arith.constant 0 : i32
    return %1, %c0_i32 : i32, i32
  }
  func.func @transform_3(%arg0: i32, %arg1: i32) -> (i32, i32, i32, i32) {
    %c0_i32 = arith.constant 0 : i32
    %c0_i32_0 = arith.constant 0 : i32
    %c0_i32_1 = arith.constant 0 : i32
    %c0_i32_2 = arith.constant 0 : i32
    return %arg0, %c0_i32, %c0_i32_0, %c0_i32_1 : i32, i32, i32, i32
  }
}

module attributes {stable_mosaic.version = 11 : i64} {
  func.func @_add_dice_kernel(%arg0: i32, %arg1: memref<1xf32, #tpu.memory_space<smem>>, %arg2: memref<8x128xf32, #tpu.memory_space<vmem>>, %arg3: memref<8x128xf32, #tpu.memory_space<vmem>>) attributes {dimension_semantics = [#tpu.dimension_semantics<parallel>], iteration_bounds = array<i64: 2>, scalar_prefetch = 0 : i64, scratch_operands = 0 : i64, tpu.core_type = #tpu.core_type<tc>, window_params = [{transform_indices = @transform_0, window_bounds = array<i64: 1>}, {transform_indices = @transform_1, window_bounds = array<i64: 8, 128>}, {transform_indices = @transform_2, window_bounds = array<i64: 8, 128>}]} {
    %c0 = arith.constant 0 : index
    %c0_0 = arith.constant 0 : index
    %0 = vector.load %arg2[%c0, %c0_0] : memref<8x128xf32, #tpu.memory_space<vmem>>, vector<8x128xf32>
    %c0_1 = arith.constant 0 : index
    %1 = memref.load %arg1[%c0_1] : memref<1xf32, #tpu.memory_space<smem>>
    %2 = vector.broadcast %1 : f32 to vector<8x128xf32>
    %3 = arith.addf %0, %2 : vector<8x128xf32>
    %c0_2 = arith.constant 0 : index
    %c0_3 = arith.constant 0 : index
    %4 = vector.load %arg3[%c0_2, %c0_3] : memref<8x128xf32, #tpu.memory_space<vmem>>, vector<8x128xf32>
    tpu.vector_store %arg3[%c0_2, %c0_3], %3 {strides = array<i32>} : memref<8x128xf32, #tpu.memory_space<vmem>>, vector<8x128xf32>,
    return
  }
  func.func @transform_0(%arg0: i32) -> i32 {
    %c0_i32 = arith.constant 0 : i32
    %c0_i32_0 = arith.constant 0 : i32
    return %c0_i32 : i32
  }
  func.func @transform_1(%arg0: i32) -> (i32, i32) {
    %c0_i32 = arith.constant 0 : i32
    %c0_i32_0 = arith.constant 0 : i32
    return %arg0, %c0_i32 : i32, i32
  }
  func.func @transform_2(%arg0: i32) -> (i32, i32) {
    %c0_i32 = arith.constant 0 : i32
    %c0_i32_0 = arith.constant 0 : i32
    return %arg0, %c0_i32 : i32, i32
  }
}

</mosaic_0001>

<bundles_post_ra>
// kernel: dice_bce_loss.2
= control target key start
LH: loop header
LB: loop body
LE: loop exit
PB: predicated region body
PF: predicated region fallthrough
CT: control target
= control target key end

     0   :  { %s472_s12 = smov 0   ;;  %s474_s13 = smov 0   ;;  %s520_s0 = inlined_call_operand.vmem [shape: f32[16,128], index: 0, kind: input, shape index: {}]   ;;  %s521_s1 = inlined_call_operand.vmem [shape: f32[16,128], index: 1, kind: input, shape index: {}]   ;;  %s522_s2 = inlined_call_operand.vmem [shape: f32[16,128], index: 2, kind: output, shape index: {0}]   ;;  %s523_s3 = inlined_call_operand.vmem [shape: f32[2,2,8,128], index: 3, kind: output, shape index: {1}]  }
   0x1   :  { %s476_s14 = smov 0  }
   0x2 LB: > { %s26_s15 = sadd.s32 1, %s446_s13  ;;  %p385_p0 = scmp.ge.s32.totalorder %s450_s14, 1  ;;  %s450_s14 = sphi %s476_s14, %s14_s14   ;;  %s446_s13 = sphi %s474_s13, %s525_s13   ;;  %s442_s12 = sphi %s472_s12, %s524_s12  }
   0x3   : > { %p28_p1 = scmp.ge.s32.totalorder %s26_s15, 2  ;;  %p170_p2 = scmp.lt.s32.totalorder %s450_s14, 3 }
   0x5   : > { %s527_s15 = smov (%p28_p1, %s26_s15), 0  ;;  %p171_p3 = pnand %p385_p0, %p170_p2 }
   0x6   : > { %p205_p4 = scmp.lt.s32.totalorder (!%p171_p3), %s442_s12, 1 }
   0x7   : > { %174 = sbr.rel (%p171_p3) target bundleno = 63 (0x3f), region = 28 }
   0xc   : > { %s529_s12 = smov (!%p205_p4, %s442_s12), 1 }
   0xd   : > { %s493_s16 = sshll.u32 %s529_s12, 3  ;;  %s396_s23 = sshll.u32 %s529_s12, 4 }
   0xe   : > { %s208_s19 = scalar_lea.vmem %s520_s0, %s493_s16  ;;  %s214_s22 = scalar_lea.vmem %s521_s1, %s493_s16 }
   0xf   : > { %v227_v0 = vld [vmem:[%s208_s19] sm:$0xff]  ;;  %s226_s26 = scalar_lea.vmem %s523_s3, %s396_s23  ;;  %s220_s29 = scalar_lea.vmem %s522_s2, %s493_s16 }
  0x10   : > { %v391_v1 = vclamps-f32 %v227_v0, 100.0  ;;  %v230_v12 = vld [vmem:[%s214_s22] sm:$0xff] }
  0x12   : > { %v231_v2 = vand.u32 2147483647, %v391_v1  ;;  %vm235_vm0 = vcmp.ge.f32.partialorder %v391_v1, 0.0  ;;  %v240_v15 = vmax.f32 %v391_v1, 0.0  ;;  %v251_v18 = vmul.f32 %v391_v1, %v230_v12 }
  0x14   : > { %v232_v3 = vsub.f32 0.0, %v231_v2 }
  0x16   : > { %v233_v4 = vmul.f32 1.442695, %v232_v3 }
  0x18   : > { %422 = vpow2.f32 %v233_v4 }
  0x25   : > { %v423_v5 = vpop.eup %422 }
  0x26   : > { %v237_v6 = vadd.f32 1.0, %v423_v5  ;;  %v244_v7 = vmul.f32 -0.5, %v423_v5  ;;  %v247_v9 = vand.u32 2147483647, %v423_v5  ;;  %v236_v10 = vsel %vm235_vm0, 1.0, %v423_v5 }
  0x28   : > { %424 = vrcp.f32 %v237_v6  ;;  %v245_v8 = vadd.f32 1.0, %v244_v7  ;;  %vm248_vm1 = vcmp.lt.f32.partialorder %v247_v9, 0.0004427343 }
  0x29   : > { %426 = vlog2.f32 %v237_v6 }
  0x2a   : > { %v246_v13 = vmul.f32 %v423_v5, %v245_v8 }
  0x35   : > { %v425_v11 = vpop.eup %424 }
  0x36   : > { %v427_v14 = vpop.eup %426  ;;  %v239_v16 = vmul.f32 %v425_v11, %v236_v10 }
  0x37   : > { %v243_v17 = vmul.f32 0.6931472, %v427_v14 }
  0x38   : > { %v254_v19 = vadd.f32 %v239_v16, %v230_v12  ;;  %v256_v20 = vmul.f32 %v239_v16, %v230_v12 }
  0x39   : > { %v249_v21 = vsel %vm248_vm1, %v246_v13, %v243_v17 }
  0x3a   : > { %v250_v22 = vadd.f32 %v249_v21, %v240_v15  ;;  %266 = vst [vmem:[%s226_s26] sm:$0xff] %v254_v19  ;;  %393 = vst [vmem:[%s226_s26 + $0x8] sm:$0xff] %v256_v20 }
  0x3c   : > { %v252_v23 = vsub.f32 %v250_v22, %v251_v18 }
  0x3e   : > { %253 = vst [vmem:[%s220_s29] sm:$0xff] %v252_v23 }
  0x3f PF: > { %s14_s14 = sadd.s32 1, %s450_s14   ;;  %s524_s12 = smov %s446_s13 }
  0x40   : > { %p11_p5 = scmp.ge.s32.totalorder %s14_s14, 4   ;;  %s525_s13 = smov %s527_s15 }
  0x42   :  { %13 = sbr.rel (!%p11_p5) target bundleno = 2 (0x2), region = 78 }

// kernel: dice_bce_loss.3
= control target key start
LH: loop header
LB: loop body
LE: loop exit
PB: predicated region body
PF: predicated region fallthrough
CT: control target
= control target key end

     0   :  { %s219_s11 = smov 0   ;;  %s247_s0 = inlined_call_operand.<no memory space> [shape: f32[1], index: 0, kind: input, shape index: {}]   ;;  %s248_s1 = inlined_call_operand.vmem [shape: f32[16,128], index: 1, kind: input, shape index: {}, may-alias: {1,2}]   ;;  %s249_s2 = inlined_call_operand.vmem [shape: f32[16,128], index: 2, kind: output, shape index: {}, may-alias: {1,2}]  }
   0x1   :  { %7 = sst [smem:[#allocation2]] %s247_s0 }
   0x2 LB: > { %s198_s12 = sadd.s32 4294967295, %s221_s11   ;;  %p202_p0 = scmp.ge.s32.totalorder %s221_s11, 1  ;;  %s221_s11 = sphi %s219_s11, %s13_s11  }
   0x3   : > { %p112_p1 = scmp.lt.s32.totalorder %s221_s11, 3 }
   0x5   : > { %p113_p2 = pnand %p202_p0, %p112_p1 }
   0x6   : > { %p132_p3 = scmp.lt.s32.totalorder (!%p113_p2), %s198_s12, 1  ;;  %s141_s13 = sld [smem:[#allocation2]] (!%p113_p2) }
   0x7   : > { %116 = sbr.rel (%p113_p2) target bundleno = 19 (0x13), region = 28 }
   0xc   : > { %s251_s12 = smov (!%p132_p3, %s198_s12), 1  ;;  %v142_v1 = vstv %s141_s13 }
   0xd   : > { %s203_s14 = sshll.u32 %s251_s12, 3 }
   0xe   : > { %s135_s17 = scalar_lea.vmem %s248_s1, %s203_s14  ;;  %s139_s0 = scalar_lea.vmem %s249_s2, %s203_s14 }
   0xf   : > { %v140_v0 = vld [vmem:[%s135_s17] sm:$0xff] }
  0x10   : > { %v143_v2 = vadd.f32 %v142_v1, %v140_v0 }
  0x12   : > { %144 = vst [vmem:[%s139_s0] sm:$0xff] %v143_v2 }
  0x13 PF: > { %s13_s11 = sadd.s32 1, %s221_s11  }
  0x14   : > { %p10_p4 = scmp.ge.s32.totalorder %s13_s11, 4  }
  0x16   :  { %12 = sbr.rel (!%p10_p4) target bundleno = 2 (0x2), region = 58 }

</bundles_post_ra>
